<compile_context>
chip_gen: v6e
topology: v6e:2x2x1
jax: 0.10.0
libtpu: 0.0.40
codegen_flags: <defaults>
</compile_context>

<pallas_src>
import functools

import jax
import jax.numpy as jnp
import numpy as np
from jax.experimental import pallas as pl
from jax.experimental.pallas import tpu as pltpu


def _jaccard_sums_kernel(pixvals_ref, logits_ref, mask_ref,
                         inter_ref, sp_ref, sm_ref,
                         *, tp, hw_valid, apply_valid):
    # pixvals_ref: (C, 1)   int32  per-class pixel value (labels_to_pixels order)
    # logits_ref : (C, TP)  logits tile (native dtype; cast to f32 here)
    # mask_ref   : (1, TP)  int32  mask pixel values tile
    # inter/sp/sm_ref: (C, 128) f32 lane-dense per-image accumulators
    t = pl.program_id(1)

    @pl.when(t == 0)
    def _():
        inter_ref[...] = jnp.zeros_like(inter_ref)
        sp_ref[...] = jnp.zeros_like(sp_ref)
        sm_ref[...] = jnp.zeros_like(sm_ref)

    logits = logits_ref[...].astype(jnp.float32)                 # (C, TP)
    c = logits.shape[0]

    # Softmax over the class (sublane) axis.
    m = jnp.max(logits, axis=0, keepdims=True)                   # (1, TP)
    e = jnp.exp(logits - m)
    probs = e / jnp.sum(e, axis=0, keepdims=True)                # (C, TP)

    # Per-class binary mask (exact integer compare).
    cls_mask = (mask_ref[...] == pixvals_ref[...]).astype(jnp.float32)  # (C, TP)

    if apply_valid:
        # Zero out HW-padding lanes (only present when H*W % TP != 0).
        pix_idx = t * tp + jax.lax.broadcasted_iota(jnp.int32, (1, tp), 1)
        valid = (pix_idx < hw_valid).astype(jnp.float32)          # (1, TP)
        probs = probs * valid
        cls_mask = cls_mask * valid

    # Lane-dense (C, 128) partial sums: pure VPU vreg adds over 128-lane
    # chunks — no cross-lane (XLU) work and no narrow (C,1) masked stores.
    inter_p = jnp.zeros((c, 128), jnp.float32)
    sp_p = jnp.zeros((c, 128), jnp.float32)
    sm_p = jnp.zeros((c, 128), jnp.float32)
    for k in range(tp // 128):
        sl = slice(k * 128, (k + 1) * 128)
        pc = probs[:, sl]
        cm = cls_mask[:, sl]
        inter_p = inter_p + pc * cm
        sp_p = sp_p + pc
        sm_p = sm_p + cm

    inter_ref[...] += inter_p
    sp_ref[...] += sp_p
    sm_ref[...] += sm_p


def jaccard_loss_pallas(logits_nchw, masks_n1hw, pixel_values, class_weights,
                        smooth=1e-6):
    """Pallas equivalent of JaccardLoss.forward.

    logits_nchw : (N, C, H, W) logits (any float dtype; read as-is)
    masks_n1hw  : (N, 1, H, W) integer-valued mask
    pixel_values: (C,) pixel value for each class (labels_to_pixels order)
    class_weights: (C,) per-class weights
    """
    N, C, H, W = logits_nchw.shape
    HW = H * W

    # Free, contiguous reshapes — no NCHW transpose, no dtype up-cast.
    logits = logits_nchw.reshape(N, C, HW)
    masks = masks_n1hw.reshape(N, 1, HW).astype(jnp.int32)
    pixvals = jnp.asarray(pixel_values, jnp.int32).reshape(C, 1)

    # Pixel tile: lane-aligned, large enough to amortize the ~0.35us/step grid
    # overhead, small enough that double-buffered (C, TP) tiles stay far below
    # v7x's 32 MiB scoped-VMEM default.
    hw128 = ((HW + 127) // 128) * 128
    itemsize = jnp.dtype(logits.dtype).itemsize
    vmem_budget = 8 * 1024 * 1024
    tp_cap = max(128, (vmem_budget // (max(C, 1) * itemsize * 2)) // 128 * 128)
    TP = int(min(2048, tp_cap, hw128))
    HW_pad = ((HW + TP - 1) // TP) * TP

    pad = HW_pad - HW
    if pad:
        logits = jnp.pad(logits, ((0, 0), (0, 0), (0, pad)))
        masks = jnp.pad(masks, ((0, 0), (0, 0), (0, pad)))
    apply_valid = pad > 0

    grid = (N, HW_pad // TP)

    kernel = functools.partial(_jaccard_sums_kernel,
                               tp=TP, hw_valid=HW, apply_valid=apply_valid)

    out_shape = tuple(jax.ShapeDtypeStruct((N, C, 128), jnp.float32)
                      for _ in range(3))
    acc_spec = pl.BlockSpec((None, C, 128), lambda n, t: (n, 0, 0))

    inter, sp, sm = pl.pallas_call(
        kernel,
        out_shape=out_shape,
        grid_spec=pltpu.PrefetchScalarGridSpec(
            num_scalar_prefetch=0,
            grid=grid,
            in_specs=[
                pl.BlockSpec((C, 1), lambda n, t: (0, 0)),            # pixvals
                pl.BlockSpec((None, C, TP), lambda n, t: (n, 0, t)),  # logits
                pl.BlockSpec((None, 1, TP), lambda n, t: (n, 0, t)),  # mask
            ],
            out_specs=[acc_spec, acc_spec, acc_spec],
        ),
        compiler_params=pltpu.CompilerParams(
            dimension_semantics=("parallel", "arbitrary")),
    )(pixvals, logits, masks)

    # Tiny finalization in glue: fold batch + lanes, then the IoU math.
    inter = jnp.sum(inter, axis=(0, 2))                   # (C,)
    sp = jnp.sum(sp, axis=(0, 2))
    sm = jnp.sum(sm, axis=(0, 2))
    union = sp + sm - inter
    iou = (inter + smooth) / (union + smooth)             # per-class IoU
    w = jnp.asarray(class_weights, jnp.float32)
    return 1.0 - jnp.mean(iou * w)


def jaccard_loss_ref(logits_nchw, masks_n1hw, pixel_values, class_weights,
                     smooth=1e-6):
    """Pure-JAX reference mirroring the PyTorch forward."""
    preds = jax.nn.softmax(logits_nchw.astype(jnp.float32), axis=1)
    masks = jnp.squeeze(masks_n1hw, axis=1)
    losses = []
    for i, pv in enumerate(pixel_values):
        pred = preds[:, i, :, :]
        mask = (masks == pv).astype(jnp.float32)
        inter = jnp.sum(pred * mask)
        union = jnp.sum(pred + mask) - inter
        iou = (inter + smooth) / (union + smooth)
        losses.append(iou * class_weights[i])
    return 1.0 - jnp.mean(jnp.stack(losses))


if __name__ == "__main__":
    # Synthetic module config (deterministic, in-script):
    labels = ["background", "road", "building", "water"]
    labels_to_pixels = {"background": 0, "road": 1, "building": 2, "water": 3}
    pixel_values = [labels_to_pixels[l] for l in labels_to_pixels]  # dict order
    class_weights = [1.0, 1.0, 1.0, 1.0]                            # default ones

    key = jax.random.PRNGKey(0)
    k1, k2, k3, k4 = jax.random.split(key, 4)

    # Case 1: lane-aligned spatial size.
    N, C, H, W = 2, 4, 16, 16
    logits = jax.random.normal(k1, (N, C, H, W), dtype=jnp.float32)
    masks = jax.random.randint(k2, (N, 1, H, W), 0, C, dtype=jnp.int32)
    loss = jax.block_until_ready(
        jaccard_loss_pallas(logits, masks, pixel_values, class_weights))
    ref = jaccard_loss_ref(logits, masks, pixel_values, class_weights)
    np.testing.assert_allclose(np.asarray(loss), np.asarray(ref),
                               rtol=1e-5, atol=1e-6)

    # Case 2: non-multiple-of-128 spatial size (exercises padding / valid-lane path).
    N2, H2, W2 = 1, 10, 10
    logits2 = jax.random.normal(k3, (N2, C, H2, W2), dtype=jnp.float32)
    masks2 = jax.random.randint(k4, (N2, 1, H2, W2), 0, C, dtype=jnp.int32)
    loss2 = jax.block_until_ready(
        jaccard_loss_pallas(logits2, masks2, pixel_values, class_weights))
    ref2 = jaccard_loss_ref(logits2, masks2, pixel_values, class_weights)
    np.testing.assert_allclose(np.asarray(loss2), np.asarray(ref2),
                               rtol=1e-5, atol=1e-6)

    print("KERNEL_OK")
</pallas_src>

<mosaic_0001>
module attributes {stable_mosaic.version = 11 : i64} {
  func.func @_jaccard_sums_kernel(%arg0: i32, %arg1: i32, %arg2: memref<4x1xi32, #tpu.memory_space<vmem>>, %arg3: memref<1x4x256xf32, #tpu.memory_space<vmem>>, %arg4: memref<1x1x256xi32, #tpu.memory_space<vmem>>, %arg5: memref<1x4x128xf32, #tpu.memory_space<vmem>>, %arg6: memref<1x4x128xf32, #tpu.memory_space<vmem>>, %arg7: memref<1x4x128xf32, #tpu.memory_space<vmem>>) attributes {dimension_semantics = [#tpu.dimension_semantics<parallel>, #tpu.dimension_semantics<arbitrary>], iteration_bounds = array<i64: 2, 1>, scalar_prefetch = 0 : i64, scratch_operands = 0 : i64, tpu.core_type = #tpu.core_type<tc>, window_params = [{pipeline_mode = #tpu.pipeline_mode<synchronous>, transform_indices = @transform_0, window_bounds = array<i64: 4, 1>}, {transform_indices = @transform_1, window_bounds = array<i64: 1, 4, 256>}, {transform_indices = @transform_2, window_bounds = array<i64: 1, 1, 256>}, {transform_indices = @transform_3, window_bounds = array<i64: 1, 4, 128>}, {transform_indices = @transform_4, window_bounds = array<i64: 1, 4, 128>}, {transform_indices = @transform_5, window_bounds = array<i64: 1, 4, 128>}]} {
    %c0_i32 = arith.constant 0 : i32
    %0 = arith.cmpi eq, %arg1, %c0_i32 : i32
    %1 = arith.extui %0 : i1 to i32
    %c0_i32_0 = arith.constant 0 : i32
    %2 = arith.cmpi ne, %1, %c0_i32_0 : i32
    scf.if %2 {
      %cst_30 = arith.constant 0.000000e+00 : f32
      %55 = vector.broadcast %cst_30 : f32 to vector<4x128xf32>
      %c0_31 = arith.constant 0 : index
      %c0_32 = arith.constant 0 : index
      %c0_33 = arith.constant 0 : index
      %56 = vector.load %arg5[%c0_31, %c0_32, %c0_33] : memref<1x4x128xf32, #tpu.memory_space<vmem>>, vector<1x4x128xf32>
      %57 = vector.shape_cast %56 : vector<1x4x128xf32> to vector<4x128xf32>
      %58 = vector.shape_cast %55 : vector<4x128xf32> to vector<1x4x128xf32>
      tpu.vector_store %arg5[%c0_31, %c0_32, %c0_33], %58 {strides = array<i32>} : memref<1x4x128xf32, #tpu.memory_space<vmem>>, vector<1x4x128xf32>,
      %cst_34 = arith.constant 0.000000e+00 : f32
      %59 = vector.broadcast %cst_34 : f32 to vector<4x128xf32>
      %c0_35 = arith.constant 0 : index
      %c0_36 = arith.constant 0 : index
      %c0_37 = arith.constant 0 : index
      %60 = vector.load %arg6[%c0_35, %c0_36, %c0_37] : memref<1x4x128xf32, #tpu.memory_space<vmem>>, vector<1x4x128xf32>
      %61 = vector.shape_cast %60 : vector<1x4x128xf32> to vector<4x128xf32>
      %62 = vector.shape_cast %59 : vector<4x128xf32> to vector<1x4x128xf32>
      tpu.vector_store %arg6[%c0_35, %c0_36, %c0_37], %62 {strides = array<i32>} : memref<1x4x128xf32, #tpu.memory_space<vmem>>, vector<1x4x128xf32>,
      %cst_38 = arith.constant 0.000000e+00 : f32
      %63 = vector.broadcast %cst_38 : f32 to vector<4x128xf32>
      %c0_39 = arith.constant 0 : index
      %c0_40 = arith.constant 0 : index
      %c0_41 = arith.constant 0 : index
      %64 = vector.load %arg7[%c0_39, %c0_40, %c0_41] : memref<1x4x128xf32, #tpu.memory_space<vmem>>, vector<1x4x128xf32>
      %65 = vector.shape_cast %64 : vector<1x4x128xf32> to vector<4x128xf32>
      %66 = vector.shape_cast %63 : vector<4x128xf32> to vector<1x4x128xf32>
      tpu.vector_store %arg7[%c0_39, %c0_40, %c0_41], %66 {strides = array<i32>} : memref<1x4x128xf32, #tpu.memory_space<vmem>>, vector<1x4x128xf32>,
    } else {
    }
    %c0 = arith.constant 0 : index
    %c0_1 = arith.constant 0 : index
    %c0_2 = arith.constant 0 : index
    %3 = vector.load %arg3[%c0, %c0_1, %c0_2] : memref<1x4x256xf32, #tpu.memory_space<vmem>>, vector<1x4x256xf32>
    %4 = vector.shape_cast %3 : vector<1x4x256xf32> to vector<4x256xf32>
    %cst = arith.constant dense<0xFF800000> : vector<256xf32>
    %5 = vector.multi_reduction <maximumf>, %4, %cst [0] : vector<4x256xf32> to vector<256xf32>
    %6 = vector.shape_cast %5 : vector<256xf32> to vector<1x256xf32>
    %7 = vector.broadcast %6 : vector<1x256xf32> to vector<4x256xf32>
    %8 = arith.subf %4, %7 : vector<4x256xf32>
    %9 = math.exp %8 : vector<4x256xf32>
    %cst_3 = arith.constant dense<0.000000e+00> : vector<256xf32>
    %10 = vector.multi_reduction <add>, %9, %cst_3 [0] : vector<4x256xf32> to vector<256xf32>
    %11 = vector.shape_cast %10 : vector<256xf32> to vector<1x256xf32>
    %12 = vector.broadcast %11 : vector<1x256xf32> to vector<4x256xf32>
    %13 = arith.divf %9, %12 : vector<4x256xf32>
    %c0_4 = arith.constant 0 : index
    %c0_5 = arith.constant 0 : index
    %c0_6 = arith.constant 0 : index
    %14 = vector.load %arg4[%c0_4, %c0_5, %c0_6] : memref<1x1x256xi32, #tpu.memory_space<vmem>>, vector<1x1x256xi32>
    %15 = vector.shape_cast %14 : vector<1x1x256xi32> to vector<1x256xi32>
    %c0_7 = arith.constant 0 : index
    %c0_8 = arith.constant 0 : index
    %16 = vector.load %arg2[%c0_7, %c0_8] : memref<4x1xi32, #tpu.memory_space<vmem>>, vector<4x1xi32>
    %17 = vector.broadcast %15 : vector<1x256xi32> to vector<4x256xi32>
    %18 = vector.broadcast %16 : vector<4x1xi32> to vector<4x256xi32>
    %19 = arith.cmpi eq, %17, %18 : vector<4x256xi32>
    %20 = arith.extui %19 : vector<4x256xi1> to vector<4x256xi32>
    %21 = arith.sitofp %20 : vector<4x256xi32> to vector<4x256xf32>
    %cst_9 = arith.constant 0.000000e+00 : f32
    %22 = vector.broadcast %cst_9 : f32 to vector<4x128xf32>
    %cst_10 = arith.constant 0.000000e+00 : f32
    %23 = vector.broadcast %cst_10 : f32 to vector<4x128xf32>
    %cst_11 = arith.constant 0.000000e+00 : f32
    %24 = vector.broadcast %cst_11 : f32 to vector<4x128xf32>
    %25 = vector.extract_strided_slice %13 {offsets = [0, 0], sizes = [4, 128], strides = [1, 1]} : vector<4x256xf32> to vector<4x128xf32>
    %26 = vector.extract_strided_slice %21 {offsets = [0, 0], sizes = [4, 128], strides = [1, 1]} : vector<4x256xf32> to vector<4x128xf32>
    %27 = arith.mulf %25, %26 : vector<4x128xf32>
    %28 = arith.addf %22, %27 : vector<4x128xf32>
    %29 = arith.addf %23, %25 : vector<4x128xf32>
    %30 = arith.addf %24, %26 : vector<4x128xf32>
    %31 = vector.extract_strided_slice %13 {offsets = [0, 128], sizes = [4, 128], strides = [1, 1]} : vector<4x256xf32> to vector<4x128xf32>
    %32 = vector.extract_strided_slice %21 {offsets = [0, 128], sizes = [4, 128], strides = [1, 1]} : vector<4x256xf32> to vector<4x128xf32>
    %33 = arith.mulf %31, %32 : vector<4x128xf32>
    %34 = arith.addf %28, %33 : vector<4x128xf32>
    %35 = arith.addf %29, %31 : vector<4x128xf32>
    %36 = arith.addf %30, %32 : vector<4x128xf32>
    %c0_12 = arith.constant 0 : index
    %c0_13 = arith.constant 0 : index
    %c0_14 = arith.constant 0 : index
    %37 = vector.load %arg5[%c0_12, %c0_13, %c0_14] : memref<1x4x128xf32, #tpu.memory_space<vmem>>, vector<1x4x128xf32>
    %38 = vector.shape_cast %37 : vector<1x4x128xf32> to vector<4x128xf32>
    %39 = arith.addf %38, %34 : vector<4x128xf32>
    %c0_15 = arith.constant 0 : index
    %c0_16 = arith.constant 0 : index
    %c0_17 = arith.constant 0 : index
    %40 = vector.load %arg5[%c0_15, %c0_16, %c0_17] : memref<1x4x128xf32, #tpu.memory_space<vmem>>, vector<1x4x128xf32>
    %41 = vector.shape_cast %40 : vector<1x4x128xf32> to vector<4x128xf32>
    %42 = vector.shape_cast %39 : vector<4x128xf32> to vector<1x4x128xf32>
    tpu.vector_store %arg5[%c0_15, %c0_16, %c0_17], %42 {strides = array<i32>} : memref<1x4x128xf32, #tpu.memory_space<vmem>>, vector<1x4x128xf32>,
    %c0_18 = arith.constant 0 : index
    %c0_19 = arith.constant 0 : index
    %c0_20 = arith.constant 0 : index
    %43 = vector.load %arg6[%c0_18, %c0_19, %c0_20] : memref<1x4x128xf32, #tpu.memory_space<vmem>>, vector<1x4x128xf32>
    %44 = vector.shape_cast %43 : vector<1x4x128xf32> to vector<4x128xf32>
    %45 = arith.addf %44, %35 : vector<4x128xf32>
    %c0_21 = arith.constant 0 : index
    %c0_22 = arith.constant 0 : index
    %c0_23 = arith.constant 0 : index
    %46 = vector.load %arg6[%c0_21, %c0_22, %c0_23] : memref<1x4x128xf32, #tpu.memory_space<vmem>>, vector<1x4x128xf32>
    %47 = vector.shape_cast %46 : vector<1x4x128xf32> to vector<4x128xf32>
    %48 = vector.shape_cast %45 : vector<4x128xf32> to vector<1x4x128xf32>
    tpu.vector_store %arg6[%c0_21, %c0_22, %c0_23], %48 {strides = array<i32>} : memref<1x4x128xf32, #tpu.memory_space<vmem>>, vector<1x4x128xf32>,
    %c0_24 = arith.constant 0 : index
    %c0_25 = arith.constant 0 : index
    %c0_26 = arith.constant 0 : index
    %49 = vector.load %arg7[%c0_24, %c0_25, %c0_26] : memref<1x4x128xf32, #tpu.memory_space<vmem>>, vector<1x4x128xf32>
    %50 = vector.shape_cast %49 : vector<1x4x128xf32> to vector<4x128xf32>
    %51 = arith.addf %50, %36 : vector<4x128xf32>
    %c0_27 = arith.constant 0 : index
    %c0_28 = arith.constant 0 : index
    %c0_29 = arith.constant 0 : index
    %52 = vector.load %arg7[%c0_27, %c0_28, %c0_29] : memref<1x4x128xf32, #tpu.memory_space<vmem>>, vector<1x4x128xf32>
    %53 = vector.shape_cast %52 : vector<1x4x128xf32> to vector<4x128xf32>
    %54 = vector.shape_cast %51 : vector<4x128xf32> to vector<1x4x128xf32>
    tpu.vector_store %arg7[%c0_27, %c0_28, %c0_29], %54 {strides = array<i32>} : memref<1x4x128xf32, #tpu.memory_space<vmem>>, vector<1x4x128xf32>,
    return
  }
  func.func @transform_0(%arg0: i32, %arg1: i32) -> (i32, i32) {
    %c0_i32 = arith.constant 0 : i32
    %c0_i32_0 = arith.constant 0 : i32
    %c0_i32_1 = arith.constant 0 : i32
    return %c0_i32, %c0_i32_0 : i32, i32
  }
  func.func @transform_1(%arg0: i32, %arg1: i32) -> (i32, i32, i32) {
    %c0_i32 = arith.constant 0 : i32
    %c0_i32_0 = arith.constant 0 : i32
    return %arg0, %c0_i32, %arg1 : i32, i32, i32
  }
  func.func @transform_2(%arg0: i32, %arg1: i32) -> (i32, i32, i32) {
    %c0_i32 = arith.constant 0 : i32
    %c0_i32_0 = arith.constant 0 : i32
    return %arg0, %c0_i32, %arg1 : i32, i32, i32
  }
  func.func @transform_3(%arg0: i32, %arg1: i32) -> (i32, i32, i32) {
    %c0_i32 = arith.constant 0 : i32
    %c0_i32_0 = arith.constant 0 : i32
    %c0_i32_1 = arith.constant 0 : i32
    return %arg0, %c0_i32, %c0_i32_0 : i32, i32, i32
  }
  func.func @transform_4(%arg0: i32, %arg1: i32) -> (i32, i32, i32) {
    %c0_i32 = arith.constant 0 : i32
    %c0_i32_0 = arith.constant 0 : i32
    %c0_i32_1 = arith.constant 0 : i32
    return %arg0, %c0_i32, %c0_i32_0 : i32, i32, i32
  }
  func.func @transform_5(%arg0: i32, %arg1: i32) -> (i32, i32, i32) {
    %c0_i32 = arith.constant 0 : i32
    %c0_i32_0 = arith.constant 0 : i32
    %c0_i32_1 = arith.constant 0 : i32
    return %arg0, %c0_i32, %c0_i32_0 : i32, i32, i32
  }
}

</mosaic_0001>

<bundles_post_ra>
// kernel: tpu_custom_call.1
= control target key start
LH: loop header
LB: loop body
LE: loop exit
PB: predicated region body
PF: predicated region fallthrough
CT: control target
= control target key end

     0   :  { %s1159_s0 = inlined_call_operand.vmem [shape: s32[4,1], index: 0, kind: input, shape index: {}]   ;;  %s1160_s1 = inlined_call_operand.hbm [shape: f32[2,4,256], index: 1, kind: input, shape index: {}]   ;;  %s1161_s2 = inlined_call_operand.vmem [shape: s32[2,1,256], index: 2, kind: input, shape index: {}]   ;;  %s1162_s3 = inlined_call_operand.hbm [shape: f32[2,4,128], index: 3, kind: output, shape index: {0}]   ;;  %s1163_s4 = inlined_call_operand.hbm [shape: f32[2,4,128], index: 4, kind: output, shape index: {1}]   ;;  %s1164_s5 = inlined_call_operand.hbm [shape: f32[2,4,128], index: 5, kind: output, shape index: {2}]  }
   0x1   :  { %1166 = sst [smem:[#allocation12_spill]] %s1159_s0 }
   0x2   :  { %1167 = sst [smem:[#allocation13_spill]] %s1160_s1 }
   0x3   :  { %11 = vsyncpa [#allocation3], 0 }
   0x4   :  { %13 = vsyncpa [#allocation3 + $0x1], 0 }
   0x5   :  { %14 = vsyncpa [#allocation4], 0 }
   0x6   :  { %16 = vsyncpa [#allocation4 + $0x1], 0 }
   0x7   :  { %17 = vsyncpa [#allocation7], 0 }
   0x8   :  { %19 = vsyncpa [#allocation7 + $0x1], 0  ;;  %s917_s18 = smov 0   ;;  %s919_s19 = smov 0  }
   0x9   :  { %s921_s20 = smov 0   ;;  %s923_s21 = smov 0  }
   0xa   :  { %s925_s22 = smov 0   ;;  %s927_s23 = smov 0  }
   0xb LB: > { %s948_s24 = sadd.s32 4294967295, %s879_s23   ;;  %s1165_s25 = sadd.s32 4294967294, %s879_s23   ;;  %s879_s23 = sphi %s927_s23, %s25_s23   ;;  %s875_s22 = sphi %s925_s22, %s1182_s22   ;;  %s871_s21 = sphi %s923_s21, %s1181_s21   ;;  %s867_s20 = sphi %s921_s20, %s1180_s20   ;;  %s863_s19 = sphi %s919_s19, %s1179_s19   ;;  %s859_s18 = sphi %s917_s18, %s1178_s18  }
   0xc   : > { %s37_s26 = sadd.s32 1, %s875_s22  ;;  %s67_s27 = sadd.s32 1, %s867_s20 }
   0xd   : > { %p39_p0 = scmp.ge.s32.totalorder %s37_s26, 2  ;;  %p74_p1 = scmp.ne.s32.totalorder %s867_s20, %s863_s19 }
   0xe   : > { %p75_p2 = scmp.eq.s32.totalorder %s879_s23, 0  ;;  %p80_p3 = scmp.ne.s32.totalorder %s863_s19, %s859_s18 }
   0xf   : > { %s1184_s26 = smov (%p39_p0, %s37_s26), 0  ;;  %p81_p5 = scmp.eq.s32.totalorder %s948_s24, 0 }
  0x10   : > { %p960_p4 = por %p75_p2, %p74_p1  ;;  %s62_s29 = ssub.s32 %s875_s22, %s1184_s26 }
  0x11   : > { %p132_p6 = scmp.eq.s32.totalorder %s948_s24, 1  ;;  %p65_p7 = scmp.eq.s32.totalorder %s62_s29, 0 }
  0x12   : > { %p968_p8 = por %p81_p5, %p80_p3  ;;  %p138_p10 = scmp.eq.s32.totalorder %s1165_s25, 1 }
  0x13   : > { %p972_p9 = por %p132_p6, %p74_p1  ;;  %p657_p13 = scmp.lt.s32.totalorder %s879_s23, 2 }
  0x14   : > { %s979_s7 = scalar_select %p65_p7, %s867_s20, %s67_s27  }
  0x15   : > { %p981_p11 = por %p138_p10, %p80_p3  ;;  %s213_s9 = sand.u32 1, %s867_s20  }
  0x16   : > { %s615_s10 = sshll.u32 %s213_s9, 3  ;;  %s634_s11 = sshll.u32 %s875_s22, 7 }
  0x17   : > { %s1171_s8 = scalar_select %p981_p11, 1, 0 }
  0x18   : > { %s1172_s1 = sld [smem:[#allocation13_spill]]  ;;  %s217_s15 = scalar_lea.vmem [#allocation2], %s615_s10 }
  0x19   : > { %s227_s16 = sshll.u32 %s217_s15, 4  ;;  %p994_p0 = pnand %p657_p13, %p960_p4  ;;  %s228_s16 = int_to_ptr.vmem [resolvable:$true] %s227_s16 }
  0x1a   : > { %p618_p1 = scmp.ge.s32.totalorder %s879_s23, 1  ;;  %p244_p2 = scmp.lt.s32.totalorder %s879_s23, 3 }
  0x1b   : > { %s214_s27 = scalar_lea.sflag [#allocation3], %s213_s9  ;;  %p717_p3 = pneg %p994_p0 }
  0x1c   : > { %s728_s29 = scalar_lea.vmem %s228_s16, 128  ;;  %s881_s12 = smov [#allocation2]  }
  0x1d   : > { %p729_p5 = scmp.ne.s32.totalorder %s228_s16, %s728_s29 }
  0x1e   : > { %s225_s14 = scalar_lea.hbm %s1172_s1, %s634_s11  ;;  %s733_s11 = sshll.u32 %s881_s12, 4  ;;  %s734_s11 = int_to_ptr.vmem [resolvable:$false] %s733_s11 }
  0x1f   : > { %p731_p6 = pnand %p729_p5, %p717_p3  ;;  %s735_s10 = scalar_lea.vmem %s734_s11, 256 }
  0x20   : > { %p736_p10 = scmp.lt.s32.totalorder %s228_s16, %s734_s11  ;;  %p737_p12 = scmp.lt.s32.totalorder %s735_s10, %s728_s29 }
  0x21   : > { %p732_p7 = pneg %p731_p6 }
  0x22   : > { %p738_p4 = por %p737_p12, %p736_p10 }
  0x24   : > { %p739_p13 = pnand %p738_p4, %p732_p7 }
  0x26   : > { %742 = shalt.err (!%p739_p13)
}
  0x27   : > { %646 = dma.hbm_to_vmem [thread:$0]  (!%p994_p0), %s225_s14, 128, %s228_s16, %s214_s27  }
  0x28   : > { %p245_p11 = pnand %p618_p1, %p244_p2 }
  0x29   : > { %s1009_s28 = sand.u32 (!%p245_p11), 1, %s863_s19  }
  0x2a   : > { %248 = sbr.rel (%p245_p11) target bundleno = 220 (0xdc), region = 32  ;;  %s619_s9 = sshll.u32 (!%p245_p11), %s1009_s28, 3 }
  0x2b   : > { %s251_s13 = scalar_lea.sflag (!%p245_p11), [#allocation3], %s1009_s28  ;;  %s254_s15 = scalar_lea.vmem (!%p245_p11), [#allocation2], %s619_s9 }
  0x2f   : > { %846 = dma.done.wait (%p968_p8), %s251_s13, 128  }
  0x30   : > { %848 = vsyncadd (%p968_p8), %s251_s13, 4294967168  ;;  %s620_s14 = sshll.u32 %s1009_s28, 2  ;;  %v882_v0 = vmov 0   ;;  %v883_v1 = vmov 0.0   ;;  %vm320_vm0 = vcmask 1043456   ;;  %s1174_s0 = sld [smem:[#allocation12_spill]] }
  0x31   : > { %709 = vset.pattern.permute.xlu0 %v882_v0  ;;  %s1018_s16 = scalar_lea.vmem [#allocation5], %s620_s14  ;;  %s1022_s17 = scalar_lea.vmem [#allocation6], %s620_s14  ;;  %v316_v3 = vld [vmem:[%s254_s15] sm:$0xff] }
  0x32   : > { %313 = vst [vmem:[%s1018_s16] sm:$0xf] %v883_v1  ;;  %314 = vst [vmem:[%s1022_s17] sm:$0xf] %v883_v1  ;;  %s1026_s27 = scalar_lea.vmem [#allocation8], %s620_s14  ;;  %v318_v4 = vcombine.high %v316_v3, %v316_v3  ;;  %v321_v5 = vsel %vm320_vm0, %v316_v3, -inf  ;;  %s409_s12 = sand.u32 1, %s948_s24  }
  0x33   : > { %315 = vst [vmem:[%s1026_s27] sm:$0xf] %v883_v1  ;;  %v322_v6 = vrot.slane %v321_v5, 4  ;;  %s1040_s11 = sshll.u32 %s871_s21, 6  ;;  %s441_s10 = sshll.u32 %s1022_s17, 4  ;;  %s442_s10 = int_to_ptr.vmem [resolvable:$true] %s441_s10 }
  0x34   : > { %v328_v7 = vsel %vm320_vm0, %v318_v4, -inf  ;;  %s439_s15 = scalar_lea.hbm %s1163_s4, %s1040_s11  ;;  %s1048_s14 = scalar_lea.sflag [#allocation7], %s409_s12 }
  0x35   : > { %v323_v8 = vmax.f32 %v321_v5, %v322_v6  ;;  %v329_v9 = vrot.slane %v328_v7, 4  ;;  %s743_s30 = scalar_lea.vmem %s442_s10, 64  ;;  %s884_s24 = smov [#allocation6]  }
  0x36   : > { %v366_v2 = vld [vmem:[%s1174_s0] sm:$0xf]  ;;  %p744_p8 = scmp.ne.s32.totalorder %s442_s10, %s743_s30  ;;  %s747_s29 = sshll.u32 %s884_s24, 4  ;;  %s748_s29 = int_to_ptr.vmem [resolvable:$false] %s747_s29 }
  0x37   : > { %376 = vperm.xlu0 %709, %v366_v2   ;;  %v324_v10 = vrot.slane %v323_v8, 2  ;;  %v330_v11 = vmax.f32 %v328_v7, %v329_v9  ;;  %s749_s25 = scalar_lea.vmem %s748_s29, 128  ;;  %p750_p0 = scmp.lt.s32.totalorder %s442_s10, %s748_s29 }
  0x38   : > { %p745_p11 = pnand %p744_p8, %p972_p9  ;;  %p751_p1 = scmp.lt.s32.totalorder %s749_s25, %s743_s30 }
  0x39   : > { %v325_v12 = vmax.f32 %v323_v8, %v324_v10  ;;  %v331_v13 = vrot.slane %v330_v11, 2  ;;  %v398_v42 = vld [vmem:[%s1022_s17] sm:$0xf] }
  0x3a   : > { %p746_p12 = pneg %p745_p11  ;;  %p752_p2 = por %p751_p1, %p750_p0 }
  0x3b   : > { %v326_v14 = vrot.slane %v325_v12, 1  ;;  %v332_v15 = vmax.f32 %v330_v11, %v331_v13 }
  0x3c   : > { %p753_p3 = pnand %p752_p2, %p746_p12 }
  0x3d   : > { %v327_v16 = vmax.f32 %v325_v12, %v326_v14  ;;  %v333_v17 = vrot.slane %v332_v15, 1 }
  0x3f   : > { %v334_v18 = vmax.f32 %v332_v15, %v333_v17 }
  0x41   : > { %v337_v19 = vcombine.low %v327_v16, %v334_v18 }
  0x43   : > { %v339_v20 = vsub.f32 %v316_v3, %v337_v19 }
  0x45   : > { %v340_v21 = vmul.f32 1.442695, %v339_v20 }
  0x47   : > { %711 = vpow2.f32 %v340_v21 }
  0x54   : > { %v712_v22 = vpop.eup %711 }
  0x55   : > { %v343_v23 = vcombine.high %v712_v22, %v712_v22  ;;  %v345_v24 = vsel %vm320_vm0, %v712_v22, 0.0 }
  0x56   : > { %v346_v25 = vrot.slane %v345_v24, 4 }
  0x57   : > { %v352_v26 = vsel %vm320_vm0, %v343_v23, 0.0 }
  0x58   : > { %v347_v27 = vadd.f32 %v346_v25, %v345_v24  ;;  %v353_v28 = vrot.slane %v352_v26, 4 }
  0x5a   : > { %v348_v29 = vrot.slane %v347_v27, 2  ;;  %v354_v30 = vadd.f32 %v353_v28, %v352_v26 }
  0x5c   : > { %v349_v31 = vadd.f32 %v348_v29, %v347_v27  ;;  %v355_v32 = vrot.slane %v354_v30, 2 }
  0x5e   : > { %v350_v33 = vrot.slane %v349_v31, 1  ;;  %v356_v34 = vadd.f32 %v355_v32, %v354_v30 }
  0x60   : > { %v351_v35 = vadd.f32 %v350_v33, %v349_v31  ;;  %v357_v36 = vrot.slane %v356_v34, 1 }
  0x62   : > { %v358_v37 = vadd.f32 %v357_v36, %v356_v34 }
  0x64   : > { %v361_v38 = vcombine.low %v351_v35, %v358_v37 }
  0x66   : > { %713 = vrcp.f32 %v361_v38 }
  0x73   : > { %v714_v39 = vpop.eup %713 }
  0x74   : > { %v364_v40 = vmul.f32 %v714_v39, %v712_v22 }
  0x76   : > { %v389_v41 = vrot.slane %v364_v40, 4 }
  0x78   : > { %v393_v43 = vadd.f32 %v389_v41, %v364_v40 }
  0x7a   : > { %v399_v44 = vadd.f32 %v398_v42, %v393_v43 }
  0x7c   : > { %400 = vst [vmem:[%s1022_s17] sm:$0xf] %v399_v44 }
  0x7d   : > { %756 = shalt.err (!%p753_p3)
}
  0x7e   : > { %s757_s9 = scalar_lea.hbm %s439_s15, 64  ;;  %s761_s13 = scalar_lea.hbm %s1163_s4, 128 }
  0x7f   : > { %p758_p5 = scmp.ne.s32.totalorder %s439_s15, %s757_s9  ;;  %p762_p10 = scmp.lt.s32.totalorder %s439_s15, %s1163_s4 }
  0x80   : > { %p763_p4 = scmp.lt.s32.totalorder %s761_s13, %s757_s9 }
  0x81   : > { %p759_p6 = pnand %p758_p5, %p972_p9 }
  0x82   : > { %p764_p13 = por %p763_p4, %p762_p10 }
  0x83   : > { %p760_p7 = pneg %p759_p6 }
  0x85   : > { %p765_p8 = pnand %p764_p13, %p760_p7 }
  0x87   : > { %768 = shalt.err (!%p765_p8)
}
  0x88   : > { %638 = dma.vmem_to_hbm [thread:$0]  (%p972_p9), %s442_s10, 64, %s439_s15, %s1048_s14   ;;  %v367_v45 = vlaneseq  ;;  %v401_v55 = vld [vmem:[%s1026_s27] sm:$0xf]  ;;  %v395_v59 = vld [vmem:[%s1018_s16] sm:$0xf] }
  0x89   : > { %p301_p11 = scmp.lt.s32.totalorder %s871_s21, 1  ;;  %s428_s10 = sshll.u32 %s1018_s16, 4  ;;  %s1089_s10 = int_to_ptr.vmem [resolvable:$true] %s428_s10 }
  0x8a   : > { %v368_v46 = vshrl.u32 %v367_v45, 7  ;;  %s1078_s29 = scalar_lea.hbm %s1164_s5, %s1040_s11  ;;  %s1087_s12 = scalar_lea.hbm %s1162_s3, %s1040_s11 }
  0x8b   : > { %s1186_s21 = smov (!%p301_p11, %s871_s21), 1 }
  0x8c   : > { %s623_s25 = sshll.u32 %s1186_s21, 1  ;;  %v369_v47 = vsub.s32 0, %v368_v46  ;;  %v373_v48 = vsub.s32 1, %v368_v46  ;;  %s454_s21 = sshll.u32 %s1026_s27, 4  ;;  %s1080_s21 = int_to_ptr.vmem [resolvable:$true] %s454_s21 }
  0x8d   : > { %s307_s1 = scalar_lea.vmem %s1161_s2, %s623_s25  ;;  %s769_s13 = scalar_lea.vmem %s1080_s21, 64 }
  0x8e   : > { %v365_v49 = vld [vmem:[%s307_s1] sm:$0x3]  ;;  %p770_p12 = scmp.ne.s32.totalorder %s1080_s21, %s769_s13  ;;  %s885_s25 = smov [#allocation8]  }
  0x8f   : > { %v370_v50 = vrot.slane %v365_v49, %v369_v47  ;;  %v374_v51 = vrot.slane %v365_v49, %v373_v48  ;;  %s773_s30 = sshll.u32 %s885_s25, 4  ;;  %s774_s30 = int_to_ptr.vmem [resolvable:$false] %s773_s30 }
  0x90   : > { %p771_p0 = pnand %p770_p12, %p972_p9  ;;  %s775_s0 = scalar_lea.vmem %s774_s30, 128 }
  0x91   : > { %p776_p2 = scmp.lt.s32.totalorder %s1080_s21, %s774_s30  ;;  %p777_p3 = scmp.lt.s32.totalorder %s775_s0, %s769_s13 }
  0x92   : > { %p772_p1 = pneg %p771_p0 }
  0x93   : > { %p778_p5 = por %p777_p3, %p776_p2 }
  0x95   : > { %p779_p6 = pnand %p778_p5, %p772_p1 }
  0xb2   : > { %v377_v52 = vpop.permute.xlu0 %376 }
  0xb3   : > { %vm378_vm1 = vcmp.eq.s32.totalorder %v370_v50, %v377_v52  ;;  %vm379_vm2 = vcmp.eq.s32.totalorder %v374_v51, %v377_v52 }
  0xb4   : > { %v624_v53 = vsel %vm378_vm1, 1.0, %v883_v1  ;;  %v625_v54 = vsel %vm379_vm2, 1.0, %v883_v1 }
  0xb5   : > { %v384_v56 = vmul.f32 %v624_v53, %v364_v40  ;;  %v391_v57 = vmul.f32 %v625_v54, %v389_v41  ;;  %v394_v58 = vadd.f32 %v625_v54, %v624_v53 }
  0xb7   : > { %v392_v60 = vadd.f32 %v391_v57, %v384_v56  ;;  %v402_v61 = vadd.f32 %v401_v55, %v394_v58 }
  0xb9   : > { %v396_v62 = vadd.f32 %v395_v59, %v392_v60  ;;  %403 = vst [vmem:[%s1026_s27] sm:$0xf] %v402_v61 }
  0xba   : > { %782 = shalt.err (!%p779_p6)
}
  0xbb   : > { %s783_s27 = scalar_lea.hbm %s1078_s29, 64  ;;  %s787_s15 = scalar_lea.hbm %s1164_s5, 128 }
  0xbc   : > { %p784_p7 = scmp.ne.s32.totalorder %s1078_s29, %s783_s27  ;;  %p788_p13 = scmp.lt.s32.totalorder %s1078_s29, %s1164_s5 }
  0xbd   : > { %p789_p8 = scmp.lt.s32.totalorder %s787_s15, %s783_s27 }
  0xbe   : > { %p785_p10 = pnand %p784_p7, %p972_p9 }
  0xbf   : > { %p790_p11 = por %p789_p8, %p788_p13 }
  0xc0   : > { %p786_p4 = pneg %p785_p10 }
  0xc2   : > { %p791_p12 = pnand %p790_p11, %p786_p4 }
  0xc4   : > { %794 = shalt.err (!%p791_p12)
}
  0xc5   : > { %639 = dma.vmem_to_hbm [thread:$0]  (%p972_p9), %s1080_s21, 64, %s1078_s29, %s1048_s14   ;;  %397 = vst [vmem:[%s1018_s16] sm:$0xf] %v396_v62 }
  0xc6   : > { %s405_s17 = scalar_lea.sflag [#allocation4], %s1009_s28  ;;  %s795_s13 = scalar_lea.vmem %s1089_s10, 64 }
  0xc7   : > { %p796_p0 = scmp.ne.s32.totalorder %s1089_s10, %s795_s13  ;;  %s886_s25 = smov [#allocation5]  }
  0xc8   : > { %s799_s30 = sshll.u32 %s886_s25, 4  ;;  %s800_s30 = int_to_ptr.vmem [resolvable:$false] %s799_s30 }
  0xc9   : > { %p797_p1 = pnand %p796_p0, %p972_p9  ;;  %s801_s0 = scalar_lea.vmem %s800_s30, 128 }
  0xca   : > { %p802_p3 = scmp.lt.s32.totalorder %s1089_s10, %s800_s30  ;;  %p803_p5 = scmp.lt.s32.totalorder %s801_s0, %s795_s13 }
  0xcb   : > { %p798_p2 = pneg %p797_p1 }
  0xcc   : > { %p804_p6 = por %p803_p5, %p802_p3 }
  0xce   : > { %p805_p7 = pnand %p804_p6, %p798_p2 }
  0xd0   : > { %808 = shalt.err (!%p805_p7)
}
  0xd1   : > { %s809_s16 = scalar_lea.hbm %s1087_s12, 64  ;;  %s813_s21 = scalar_lea.hbm %s1162_s3, 128 }
  0xd2   : > { %p810_p10 = scmp.ne.s32.totalorder %s1087_s12, %s809_s16  ;;  %p814_p8 = scmp.lt.s32.totalorder %s1087_s12, %s1162_s3 }
  0xd3   : > { %p815_p11 = scmp.lt.s32.totalorder %s813_s21, %s809_s16 }
  0xd4   : > { %p811_p4 = pnand %p810_p10, %p972_p9 }
  0xd5   : > { %p816_p12 = por %p815_p11, %p814_p8 }
  0xd6   : > { %p812_p13 = pneg %p811_p4 }
  0xd8   : > { %p817_p0 = pnand %p816_p12, %p812_p13 }
  0xda   : > { %820 = shalt.err (!%p817_p0)
}
  0xdb   : > { %637 = dma.vmem_to_hbm [thread:$0]  (%p972_p9), %s1089_s10, 64, %s1087_s12, %s405_s17  }
  0xdc PF: > { %s466_s11 = sand.u32 1, %s859_s18   ;;  %p1175_p1 = scmp.ne.s32.totalorder %s1171_s8, 0 }
  0xdd   : > { %p1176_p2 = scmp.ge.s32.totalorder %s879_s23, 2  ;;  %s467_s1 = scalar_lea.sflag [#allocation4], %s466_s11 }
  0xdf   : > { %p648_p3 = pnand %p1176_p2, %p1175_p1 }
  0xe1   : > { %p649_p5 = pneg %p648_p3 }
  0xe3   : > { %850 = dma.done.wait (%p649_p5), %s467_s1, 64  }
  0xe4   : > { %852 = vsyncadd (%p649_p5), %s467_s1, 4294967232  ;;  %s1177_s15 = sadd.s32 4294967294, %s879_s23  }
  0xe5   : > { %s475_s24 = sand.u32 1, %s1177_s15  }
  0xe6   : > { %s476_s9 = scalar_lea.sflag [#allocation7], %s475_s24 }
  0xe7   : > { %854 = dma.done.wait (%p649_p5), %s476_s9, 128  }
  0xe8   : > { %856 = vsyncadd (%p649_p5), %s476_s9, 4294967168  ;;  %s25_s23 = sadd.s32 1, %s879_s23   ;;  %s1178_s18 = smov %s863_s19 }
  0xe9   : > { %p22_p9 = scmp.ge.s32.totalorder %s25_s23, 4   ;;  %s1179_s19 = smov %s867_s20 }
  0xea   : > { %s1180_s20 = smov %s979_s7  ;;  %s1181_s21 = smov %s875_s22 }
  0xeb   : > { %s1182_s22 = smov %s1184_s26  ;;  %24 = sbr.rel (!%p22_p9) target bundleno = 11 (0xb), region = 116 }
  0xf0   :  { %490 = vsyncpa [#allocation3], 1 }
  0xf1   :  { %492 = vsyncpa [#allocation3 + $0x1], 1 }
  0xf2   :  { %493 = vsyncpa [#allocation4], 1 }
  0xf3   :  { %495 = vsyncpa [#allocation4 + $0x1], 1 }
  0xf4   :  { %496 = vsyncpa [#allocation7], 1 }
  0xf5   :  { %498 = vsyncpa [#allocation7 + $0x1], 1 }

</bundles_post_ra>
